<compile_context>
chip_gen: v6e
topology: v6e:2x2x1
jax: 0.10.0
libtpu: 0.0.40
codegen_flags: <defaults>
</compile_context>

<pallas_src>
import numpy as np
import jax
import jax.numpy as jnp
from jax import lax
from jax.experimental import pallas as pl
from jax.experimental.pallas import tpu as pltpu


# ----------------------------- generic row-tiled linear kernel -----------------------------
def _linear_kernel(x_ref, w_ref, b_ref, o_ref):
    o_ref[...] = (jnp.dot(x_ref[...], w_ref[...], preferred_element_type=jnp.float32)
                  + b_ref[...])


def linear(x2d, w_dk, bias_1k, *, row_block=512):
    """x2d: (N, Din) f32; w_dk: (Din, Dout); bias_1k: (1, Dout). Returns (N, Dout) f32."""
    N, D = x2d.shape
    K = w_dk.shape[1]
    tn = N if (N <= row_block or N % row_block != 0) else row_block
    return pl.pallas_call(
        _linear_kernel,
        grid=(N // tn,),
        in_specs=[pl.BlockSpec((tn, D), lambda i: (i, 0)),
                  pl.BlockSpec((D, K), lambda i: (0, 0)),
                  pl.BlockSpec((1, K), lambda i: (0, 0))],
        out_specs=pl.BlockSpec((tn, K), lambda i: (i, 0)),
        out_shape=jax.ShapeDtypeStruct((N, K), jnp.float32),
        compiler_params=pltpu.CompilerParams(dimension_semantics=("parallel",)),
    )(x2d, w_dk, bias_1k)


# ------------------------------- fused BiLSTM recurrence kernels ----------------------------
def _lstm_cell(pre_gates, h, c, whh_t):
    """pre_gates = x@W_ih + b (hoisted); whh_t: (H, 4H); PyTorch gate order (i, f, g, o)."""
    H = whh_t.shape[0]
    gates = pre_gates + jnp.dot(h, whh_t, preferred_element_type=jnp.float32)
    i_g = jax.nn.sigmoid(gates[:, 0 * H:1 * H])
    f_g = jax.nn.sigmoid(gates[:, 1 * H:2 * H])
    g_g = jnp.tanh(gates[:, 2 * H:3 * H])
    o_g = jax.nn.sigmoid(gates[:, 3 * H:4 * H])
    c_new = f_g * c + i_g * g_g
    h_new = o_g * jnp.tanh(c_new)
    return h_new, c_new


def _char_bilstm_kernel(pre_ref, whh_f_ref, whh_b_ref, hsum_ref):
    # pre_ref: (T, N, 8H) pregates [fwd | bwd]; output: h_last_fwd + h_last_bwd (N, H).
    # No mask: the reference char LSTM runs over padded char positions (no packing).
    T, N, _ = pre_ref.shape
    H = whh_f_ref.shape[0]
    whh_f = whh_f_ref[...]
    whh_b = whh_b_ref[...]
    z = jnp.zeros((N, H), jnp.float32)

    def body(t, carry):
        hf, cf, hb, cb = carry
        pre_t = pre_ref[t]                       # (N, 8H)
        hf, cf = _lstm_cell(pre_t[:, :4 * H], hf, cf, whh_f)
        pre_b = pre_ref[T - 1 - t]
        hb, cb = _lstm_cell(pre_b[:, 4 * H:], hb, cb, whh_b)
        return hf, cf, hb, cb

    hf, _, hb, _ = lax.fori_loop(0, T, body, (z, z, z, z))
    hsum_ref[...] = hf + hb                      # == char_hidden[-1] + char_hidden[-2]


def _word_bilstm_kernel(pre_ref, mask_ref, whh_f_ref, whh_b_ref, out_f_ref, out_b_ref):
    # pre_ref: (T, B, 8H); mask: (T, B, 1).  Packed-seq semantics: state held and outputs
    # zeroed on padded steps.  Emits the two direction halves as separate (T, B, H) outputs.
    T, B, _ = pre_ref.shape
    H = whh_f_ref.shape[0]
    whh_f = whh_f_ref[...]
    whh_b = whh_b_ref[...]
    z = jnp.zeros((B, H), jnp.float32)

    def body(t, carry):
        hf, cf, hb, cb = carry
        # forward direction, time t
        m_t = mask_ref[t]                        # (B, 1)
        pre_t = pre_ref[t]                       # (B, 8H)
        h_new, c_new = _lstm_cell(pre_t[:, :4 * H], hf, cf, whh_f)
        out_f_ref[t] = m_t * h_new
        hf = m_t * h_new + (1.0 - m_t) * hf
        cf = m_t * c_new + (1.0 - m_t) * cf
        # reverse direction, time T-1-t
        tb = T - 1 - t
        m_b = mask_ref[tb]
        pre_b = pre_ref[tb]
        h_new_b, c_new_b = _lstm_cell(pre_b[:, 4 * H:], hb, cb, whh_b)
        out_b_ref[tb] = m_b * h_new_b
        hb = m_b * h_new_b + (1.0 - m_b) * hb
        cb = m_b * c_new_b + (1.0 - m_b) * cb
        return hf, cf, hb, cb

    lax.fori_loop(0, T, body, (z, z, z, z))


def char_bilstm(pregates, whh_f_t, whh_b_t):
    T, N, G = pregates.shape
    H = whh_f_t.shape[0]
    return pl.pallas_call(
        _char_bilstm_kernel,
        grid=(1,),
        in_specs=[pl.BlockSpec((T, N, G), lambda i: (0, 0, 0)),
                  pl.BlockSpec((H, 4 * H), lambda i: (0, 0)),
                  pl.BlockSpec((H, 4 * H), lambda i: (0, 0))],
        out_specs=pl.BlockSpec((N, H), lambda i: (0, 0)),
        out_shape=jax.ShapeDtypeStruct((N, H), jnp.float32),
    )(pregates, whh_f_t, whh_b_t)


def word_bilstm(pregates, mask_tm, whh_f_t, whh_b_t):
    T, B, G = pregates.shape
    H = whh_f_t.shape[0]
    return pl.pallas_call(
        _word_bilstm_kernel,
        grid=(1,),
        in_specs=[pl.BlockSpec((T, B, G), lambda i: (0, 0, 0)),
                  pl.BlockSpec((T, B, 1), lambda i: (0, 0, 0)),
                  pl.BlockSpec((H, 4 * H), lambda i: (0, 0)),
                  pl.BlockSpec((H, 4 * H), lambda i: (0, 0))],
        out_specs=(pl.BlockSpec((T, B, H), lambda i: (0, 0, 0)),
                   pl.BlockSpec((T, B, H), lambda i: (0, 0, 0))),
        out_shape=(jax.ShapeDtypeStruct((T, B, H), jnp.float32),
                   jax.ShapeDtypeStruct((T, B, H), jnp.float32)),
    )(pregates, mask_tm, whh_f_t, whh_b_t)


# -------------------------- emission linear (consumes both LSTM halves) ---------------------
def _emission_kernel(xf_ref, xb_ref, wf_ref, wb_ref, b_ref, o_ref):
    o_ref[...] = (jnp.dot(xf_ref[...], wf_ref[...], preferred_element_type=jnp.float32)
                  + jnp.dot(xb_ref[...], wb_ref[...], preferred_element_type=jnp.float32)
                  + b_ref[...])


def emission_linear(xf2d, xb2d, wf, wb, bias_1k, *, row_block=512):
    N, H = xf2d.shape
    K = wf.shape[1]
    tn = N if (N <= row_block or N % row_block != 0) else row_block
    return pl.pallas_call(
        _emission_kernel,
        grid=(N // tn,),
        in_specs=[pl.BlockSpec((tn, H), lambda i: (i, 0)),
                  pl.BlockSpec((tn, H), lambda i: (i, 0)),
                  pl.BlockSpec((H, K), lambda i: (0, 0)),
                  pl.BlockSpec((H, K), lambda i: (0, 0)),
                  pl.BlockSpec((1, K), lambda i: (0, 0))],
        out_specs=pl.BlockSpec((tn, K), lambda i: (i, 0)),
        out_shape=jax.ShapeDtypeStruct((N, K), jnp.float32),
        compiler_params=pltpu.CompilerParams(dimension_semantics=("parallel",)),
    )(xf2d, xb2d, wf, wb, bias_1k)


# ----------------------------------------- CRF loss -----------------------------------------
def _crf_loss_kernel(emit_ref, tags_ref, mask_ref, trans_t_ref, loss_ref):
    # emit: (T, B, K); tags: (T, B, 1) int32; mask: (T, B, 1) f32;
    # trans_t: (K, K) with trans_t[c, p] = transition[p, c]; out loss: (B, 1).
    T, B, K = emit_ref.shape
    trans_t = trans_t_ref[...]
    iota_k = jax.lax.broadcasted_iota(jnp.int32, (B, K), 1)      # hoisted out of the loop

    def onehot(tag_b1):
        return (tag_b1 == iota_k).astype(jnp.float32)            # (B, K)

    emit0 = emit_ref[0]
    oh0 = onehot(tags_ref[0])
    gold0 = jnp.sum(emit0 * oh0, axis=-1, keepdims=True) * mask_ref[0]   # (B, 1)
    alpha0 = emit0                                                        # (B, K)

    def body(t, carry):
        alpha, gold = carry
        emit_t = emit_ref[t]                                     # (B, K)
        m_t = mask_ref[t]                                        # (B, 1)
        oh_t = onehot(tags_ref[t])
        oh_p = onehot(tags_ref[t - 1])
        # gold path score: emission + transition[tag_{t-1}, tag_t], masked like torch
        e_score = jnp.sum(emit_t * oh_t, axis=-1, keepdims=True)
        t_rows = jnp.dot(oh_t, trans_t, preferred_element_type=jnp.float32)  # trans[p, tag_t]
        t_score = jnp.sum(oh_p * t_rows, axis=-1, keepdims=True)
        gold = gold + m_t * (e_score + t_score)
        # forward recursion: new_alpha[b,c] = emit[b,c] + logsumexp_p(alpha[b,p] + trans[p,c])
        v = alpha[:, None, :] + trans_t[None, :, :]              # (B, K, K), last axis = p
        mx = jnp.max(v, axis=-1, keepdims=True)
        lse = mx + jnp.log(jnp.sum(jnp.exp(v - mx), axis=-1, keepdims=True))
        new_alpha = lse[:, :, 0] + emit_t
        alpha = m_t * new_alpha + (1.0 - m_t) * alpha
        return alpha, gold

    alpha, gold = lax.fori_loop(1, T, body, (alpha0, gold0))
    mxf = jnp.max(alpha, axis=-1, keepdims=True)
    logz = mxf + jnp.log(jnp.sum(jnp.exp(alpha - mxf), axis=-1, keepdims=True))  # (B, 1)
    loss_ref[...] = logz - gold


def crf_loss(emit_tm, tags_tm, mask_tm, transition):
    T, B, K = emit_tm.shape
    loss = pl.pallas_call(
        _crf_loss_kernel,
        grid=(1,),
        in_specs=[pl.BlockSpec((T, B, K), lambda i: (0, 0, 0)),
                  pl.BlockSpec((T, B, 1), lambda i: (0, 0, 0)),
                  pl.BlockSpec((T, B, 1), lambda i: (0, 0, 0)),
                  pl.BlockSpec((K, K), lambda i: (0, 0))],
        out_specs=pl.BlockSpec((B, 1), lambda i: (0, 0)),
        out_shape=jax.ShapeDtypeStruct((B, 1), jnp.float32),
    )(emit_tm, tags_tm, mask_tm, transition.T)
    return loss[:, 0]


# ------------------------------------------ forward -----------------------------------------
def char_bilstm_crf_forward(params, sentences, lengths, words, tags, sent_pad_token):
    del lengths  # packing reproduced via the padding-derived mask (lengths sorted desc.)
    B, S = sentences.shape
    W = words.shape[-1]
    f32 = jnp.float32

    # ---- char BiLSTM encoder: all B*S words as one batch (== the per-sentence loop) ----
    char_emb = params["char_embedding"][words].astype(f32)                  # (B, S, W, Ce)
    Ce = char_emb.shape[-1]
    Hc = params["char_w_hh_f"].shape[1]
    N = B * S
    char_x_tm = char_emb.reshape(N, W, Ce).transpose(1, 0, 2)               # (W, N, Ce)
    # hoisted input projection for BOTH directions: one (W*N, Ce) x (Ce, 8Hc) matmul
    wih_c = jnp.concatenate([params["char_w_ih_f"].T, params["char_w_ih_b"].T], axis=1)
    b_c = jnp.concatenate([params["char_b_ih_f"] + params["char_b_hh_f"],
                           params["char_b_ih_b"] + params["char_b_hh_b"]])[None, :]
    pre_c = linear(char_x_tm.reshape(W * N, Ce), wih_c, b_c).reshape(W, N, 8 * Hc)
    char_enc = char_bilstm(pre_c, params["char_w_hh_f"].T, params["char_w_hh_b"].T)  # (N, Hc)
    char_enc = char_enc.reshape(B, S, Hc)

    # ---- word BiLSTM over [embedding ++ char encoding] with packed-sequence masking ----
    mask = (sentences != sent_pad_token).astype(f32)                        # (B, S)
    emb = params["embedding"][sentences].astype(f32)                        # (B, S, E)
    x = jnp.concatenate([emb, char_enc], axis=-1)                           # (B, S, D)
    D = x.shape[-1]
    H = params["w_hh_f"].shape[1]
    x_tm = x.transpose(1, 0, 2)                                             # (S, B, D)
    mask_tm = mask.T[:, :, None]                                            # (S, B, 1)
    wih_w = jnp.concatenate([params["w_ih_f"].T, params["w_ih_b"].T], axis=1)        # (D, 8H)
    b_w = jnp.concatenate([params["b_ih_f"] + params["b_hh_f"],
                           params["b_ih_b"] + params["b_hh_b"]])[None, :]             # (1, 8H)
    pre_w = linear(x_tm.reshape(S * B, D), wih_w, b_w).reshape(S, B, 8 * H)
    out_f, out_b = word_bilstm(pre_w, mask_tm, params["w_hh_f"].T, params["w_hh_b"].T)

    # ---- emission scores (the (S,B,2H) "combined" tensor is never materialized) ----
    K = params["emission_w"].shape[0]
    we_t = params["emission_w"].T                                           # (2H, K)
    emit = emission_linear(out_f.reshape(S * B, H), out_b.reshape(S * B, H),
                           we_t[:H, :], we_t[H:, :],
                           params["emission_b"][None, :]).reshape(S, B, K)

    # ---- CRF negative log-likelihood per sequence (== vitebri_loss) ----
    tags_tm = tags.T[:, :, None].astype(jnp.int32)                          # (S, B, 1)
    return crf_loss(emit, tags_tm, mask_tm, params["transition"])


# ---------------------------------------- param init ----------------------------------------
def init_params(key, *, vocab_size, emb_dim, hid_dim, char_emb_dim, char_hid_dim,
                char_vocab_size, tag_vocab_size):
    ks = iter(jax.random.split(key, 32))

    def unif(shape, scale):
        return jax.random.uniform(next(ks), shape, jnp.float32, -scale, scale)

    p = {}
    p["char_embedding"] = jax.random.normal(
        next(ks), (char_vocab_size, char_emb_dim), jnp.float32).at[0].set(0.0)  # padding_idx=0
    p["embedding"] = jax.random.normal(
        next(ks), (vocab_size, emb_dim), jnp.float32).at[0].set(0.0)            # padding_idx=0
    sc = 1.0 / float(np.sqrt(char_hid_dim))
    for suf in ("f", "b"):
        p[f"char_w_ih_{suf}"] = unif((4 * char_hid_dim, char_emb_dim), sc)
        p[f"char_w_hh_{suf}"] = unif((4 * char_hid_dim, char_hid_dim), sc)
        p[f"char_b_ih_{suf}"] = unif((4 * char_hid_dim,), sc)
        p[f"char_b_hh_{suf}"] = unif((4 * char_hid_dim,), sc)
    sw = 1.0 / float(np.sqrt(hid_dim))
    din = emb_dim + char_hid_dim
    for suf in ("f", "b"):
        p[f"w_ih_{suf}"] = unif((4 * hid_dim, din), sw)
        p[f"w_hh_{suf}"] = unif((4 * hid_dim, hid_dim), sw)
        p[f"b_ih_{suf}"] = unif((4 * hid_dim,), sw)
        p[f"b_hh_{suf}"] = unif((4 * hid_dim,), sw)
    se = 1.0 / float(np.sqrt(2 * hid_dim))
    p["emission_w"] = unif((tag_vocab_size, 2 * hid_dim), se)
    p["emission_b"] = unif((tag_vocab_size,), se)
    p["transition"] = jax.random.uniform(next(ks), (tag_vocab_size, tag_vocab_size), jnp.float32)
    return p


if __name__ == "__main__":
    B, S, W = 2, 8, 6
    vocab_size, emb_dim, hid_dim = 50, 16, 32
    char_emb_dim, char_hid_dim, char_vocab_size = 8, 16, 30
    tag_vocab_size = 6
    SENT_PAD = 0
    TAG_START = 5   # only used by predict() in the reference module; kept for config fidelity

    key = jax.random.PRNGKey(0)
    k_param, k_sent, k_word, k_tag = jax.random.split(key, 4)
    params = init_params(k_param, vocab_size=vocab_size, emb_dim=emb_dim, hid_dim=hid_dim,
                         char_emb_dim=char_emb_dim, char_hid_dim=char_hid_dim,
                         char_vocab_size=char_vocab_size, tag_vocab_size=tag_vocab_size)

    lengths = jnp.array([S, 5], jnp.int32)                 # sorted descending (pack_padded_sequence)
    pos = jnp.arange(S)[None, :]
    valid = pos < lengths[:, None]                         # (B, S)
    sentences = jnp.where(valid, jax.random.randint(k_sent, (B, S), 1, vocab_size), 0).astype(jnp.int32)
    words = jnp.where(valid[:, :, None],
                      jax.random.randint(k_word, (B, S, W), 1, char_vocab_size), 0).astype(jnp.int32)
    words = words.at[:, :, W - 2:].set(0)                  # trailing char padding (char pad id = 0)
    tags = jnp.where(valid, jax.random.randint(k_tag, (B, S), 0, tag_vocab_size), 0).astype(jnp.int32)

    loss = char_bilstm_crf_forward(params, sentences, lengths, words, tags, SENT_PAD)
    loss = jax.block_until_ready(loss)
    assert loss.shape == (B,) and bool(jnp.all(jnp.isfinite(loss)))
    print("KERNEL_OK")
</pallas_src>

<mosaic_0001>
module attributes {stable_mosaic.version = 11 : i64} {
  func.func @_linear_kernel(%arg0: i32, %arg1: memref<96x8xf32, #tpu.memory_space<vmem>>, %arg2: memref<8x128xf32, #tpu.memory_space<vmem>>, %arg3: memref<1x128xf32, #tpu.memory_space<vmem>>, %arg4: memref<96x128xf32, #tpu.memory_space<vmem>>) attributes {dimension_semantics = [#tpu.dimension_semantics<parallel>], iteration_bounds = array<i64: 1>, scalar_prefetch = 0 : i64, scratch_operands = 0 : i64, tpu.core_type = #tpu.core_type<tc>, window_params = [{transform_indices = @transform_0, window_bounds = array<i64: 96, 8>}, {pipeline_mode = #tpu.pipeline_mode<synchronous>, transform_indices = @transform_1, window_bounds = array<i64: 8, 128>}, {pipeline_mode = #tpu.pipeline_mode<synchronous>, transform_indices = @transform_2, window_bounds = array<i64: 1, 128>}, {transform_indices = @transform_3, window_bounds = array<i64: 96, 128>}]} {
    %c0 = arith.constant 0 : index
    %c0_0 = arith.constant 0 : index
    %0 = vector.load %arg1[%c0, %c0_0] : memref<96x8xf32, #tpu.memory_space<vmem>>, vector<96x8xf32>
    %c0_1 = arith.constant 0 : index
    %c0_2 = arith.constant 0 : index
    %1 = vector.load %arg2[%c0_1, %c0_2] : memref<8x128xf32, #tpu.memory_space<vmem>>, vector<8x128xf32>
    %cst = arith.constant dense<0.000000e+00> : vector<96x128xf32>
    %2 = tpu.matmul %0, %1, %cst {dimension_numbers = #tpu.dot_dimension_numbers<[1], [0], [0], [1], [0, 0, 1, 1], [], []>} : vector<96x8xf32>, vector<8x128xf32>, vector<96x128xf32> -> vector<96x128xf32>
    %c0_3 = arith.constant 0 : index
    %c0_4 = arith.constant 0 : index
    %3 = vector.load %arg3[%c0_3, %c0_4] : memref<1x128xf32, #tpu.memory_space<vmem>>, vector<1x128xf32>
    %4 = vector.broadcast %3 : vector<1x128xf32> to vector<96x128xf32>
    %5 = arith.addf %2, %4 : vector<96x128xf32>
    %c0_5 = arith.constant 0 : index
    %c0_6 = arith.constant 0 : index
    %6 = vector.load %arg4[%c0_5, %c0_6] : memref<96x128xf32, #tpu.memory_space<vmem>>, vector<96x128xf32>
    tpu.vector_store %arg4[%c0_5, %c0_6], %5 {strides = array<i32>} : memref<96x128xf32, #tpu.memory_space<vmem>>, vector<96x128xf32>,
    return
  }
  func.func @transform_0(%arg0: i32) -> (i32, i32) {
    %c0_i32 = arith.constant 0 : i32
    %c0_i32_0 = arith.constant 0 : i32
    return %arg0, %c0_i32 : i32, i32
  }
  func.func @transform_1(%arg0: i32) -> (i32, i32) {
    %c0_i32 = arith.constant 0 : i32
    %c0_i32_0 = arith.constant 0 : i32
    %c0_i32_1 = arith.constant 0 : i32
    return %c0_i32, %c0_i32_0 : i32, i32
  }
  func.func @transform_2(%arg0: i32) -> (i32, i32) {
    %c0_i32 = arith.constant 0 : i32
    %c0_i32_0 = arith.constant 0 : i32
    %c0_i32_1 = arith.constant 0 : i32
    return %c0_i32, %c0_i32_0 : i32, i32
  }
  func.func @transform_3(%arg0: i32) -> (i32, i32) {
    %c0_i32 = arith.constant 0 : i32
    %c0_i32_0 = arith.constant 0 : i32
    return %arg0, %c0_i32 : i32, i32
  }
}

</mosaic_0001>

<bundles_post_ra>
// kernel: tpu_custom_call.1
= control target key start
LH: loop header
LB: loop body
LE: loop exit
PB: predicated region body
PF: predicated region fallthrough
CT: control target
= control target key end

     0   :  { %vm35_vm0 = vcmask 64512   ;;  %s378_s0 = inlined_call_operand.vmem [shape: f32[96,8], index: 0, kind: input, shape index: {}]   ;;  %s379_s1 = inlined_call_operand.vmem [shape: f32[8,128], index: 1, kind: input, shape index: {}]   ;;  %s380_s2 = inlined_call_operand.vmem [shape: f32[1,128], index: 2, kind: input, shape index: {}]   ;;  %s381_s3 = inlined_call_operand.hbm [shape: f32[96,128], index: 3, kind: output, shape index: {}]  }
   0x1   :  { %v27_v0 = vld [vmem:[%s379_s1] sm:$0xff]  ;;  %v21_v2 = vld [vmem:[%s378_s0 + $0x30] sm:$0xff]  ;;  %v16_v3 = vld [vmem:[%s378_s0 + $0x8] sm:$0xff] }
   0x2   :  { %v15_v1 = vld [vmem:[%s378_s0] sm:$0xff]  ;;  %251 = vmatprep.subr.mxu0 %v27_v0  ;;  %271 = vmatprep.subr.mxu1 %v27_v0  ;;  %v22_v4 = vld [vmem:[%s378_s0 + $0x38] sm:$0xff]  ;;  %v17_v5 = vld [vmem:[%s378_s0 + $0x10] sm:$0xff] }
   0x3   :  { %252 = vmatpush3.msra.mxu0 %v27_v0  ;;  %272 = vmatpush3.msra.mxu1 %v27_v0  ;;  %v23_v6 = vld [vmem:[%s378_s0 + $0x40] sm:$0xff] }
   0x4   :  { %253 = vmatprep.mubr.msk.f32.mxu0 %vm35_vm0, %v15_v1  ;;  %262 = vmatprep.mubr.msk.f32.mxu1 %vm35_vm0, %v21_v2 }
   0x5   :  { %254 = vmatmul.mubr.msk.f32.vlgmr.msra.gmra.mxu0 %vm35_vm0, %v16_v3  ;;  %263 = vmatmul.mubr.msk.f32.vlgmr.msra.gmra.mxu1 %vm35_vm0, %v22_v4 }
   0x6   :  { %8 = vsyncpa [#allocation3], 0  ;;  %256 = vmatprep.mubr.msk.f32.mxu0 %vm35_vm0, %v17_v5  ;;  %265 = vmatprep.mubr.msk.f32.mxu1 %vm35_vm0, %v23_v6  ;;  %v18_v7 = vld [vmem:[%s378_s0 + $0x18] sm:$0xff]  ;;  %v24_v8 = vld [vmem:[%s378_s0 + $0x48] sm:$0xff] }
   0x7   :  { %v19_v9 = vld [vmem:[%s378_s0 + $0x20] sm:$0xff]  ;;  %v25_v10 = vld [vmem:[%s378_s0 + $0x50] sm:$0xff]  ;;  %v20_v11 = vld [vmem:[%s378_s0 + $0x28] sm:$0xff] }
   0x8   :  { %v26_v12 = vld [vmem:[%s378_s0 + $0x58] sm:$0xff]  ;;  %v225_v13 = vld [vmem:[%s380_s2] ss:$0 sm:$0xff]  ;;  %s298_s0 = smov [#allocation2]  }
   0x9   :  { %257 = vmatmul.mubr.msk.f32.gmra.mxu0 %vm35_vm0, %v18_v7  ;;  %266 = vmatmul.mubr.msk.f32.gmra.mxu1 %vm35_vm0, %v24_v8  ;;  %s214_s2 = sshll.u32 %s298_s0, 4  ;;  %s215_s2 = int_to_ptr.vmem [resolvable:$true] %s214_s2 }
   0xa   :  { %259 = vmatprep.mubr.msk.f32.mxu0 %vm35_vm0, %v19_v9  ;;  %268 = vmatprep.mubr.msk.f32.mxu1 %vm35_vm0, %v25_v10  ;;  %s276_s12 = scalar_lea.vmem %s215_s2, 1536  ;;  %p281_p1 = scmp.lt.s32.totalorder %s215_s2, %s215_s2 }
   0xb   :  { %p277_p0 = scmp.ne.s32.totalorder %s215_s2, %s276_s12  ;;  %p282_p2 = scmp.lt.s32.totalorder %s276_s12, %s276_s12 }
   0xd   :  { %260 = vmatmul.mubr.msk.f32.gmra.mxu0 %vm35_vm0, %v20_v11  ;;  %269 = vmatmul.mubr.msk.f32.gmra.mxu1 %vm35_vm0, %v26_v12  ;;  %p283_p3 = por %p282_p2, %p281_p1 }
   0xf   :  { %p284_p4 = pnand %p283_p3, %p277_p0 }
  0xc5   :  { %v255_v14 = vpop.f32.mrf.mxu0  ;;  %v264_v15 = vpop.f32.mrf.mxu1 }
  0xc6   :  { %v144_v16 = vadd.f32 %v255_v14, %v225_v13  ;;  %v174_v17 = vadd.f32 %v264_v15, %v225_v13 }
  0xc7   :  { %v138_v18 = vpop.f32.mrf.mxu0  ;;  %v168_v19 = vpop.f32.mrf.mxu1 }
  0xc8   :  { %198 = vst [vmem:[#allocation2 + $0x8] sm:$0xff] %v144_v16  ;;  %204 = vst [vmem:[#allocation2 + $0x38] sm:$0xff] %v174_v17  ;;  %v139_v20 = vadd.f32 %v225_v13, %v138_v18  ;;  %v169_v21 = vadd.f32 %v225_v13, %v168_v19 }
  0xc9   :  { %v258_v22 = vpop.f32.mrf.mxu0  ;;  %v267_v23 = vpop.f32.mrf.mxu1 }
  0xca   :  { %197 = vst [vmem:[#allocation2] sm:$0xff] %v139_v20  ;;  %203 = vst [vmem:[#allocation2 + $0x30] sm:$0xff] %v169_v21  ;;  %v154_v24 = vadd.f32 %v258_v22, %v225_v13  ;;  %v184_v25 = vadd.f32 %v267_v23, %v225_v13 }
  0xcb   :  { %v148_v26 = vpop.f32.mrf.mxu0  ;;  %v178_v27 = vpop.f32.mrf.mxu1 }
  0xcc   :  { %200 = vst [vmem:[#allocation2 + $0x18] sm:$0xff] %v154_v24  ;;  %206 = vst [vmem:[#allocation2 + $0x48] sm:$0xff] %v184_v25  ;;  %v149_v28 = vadd.f32 %v225_v13, %v148_v26  ;;  %v179_v29 = vadd.f32 %v225_v13, %v178_v27 }
  0xcd   :  { %v261_v30 = vpop.f32.mrf.mxu0  ;;  %v270_v31 = vpop.f32.mrf.mxu1 }
  0xce   :  { %199 = vst [vmem:[#allocation2 + $0x10] sm:$0xff] %v149_v28  ;;  %205 = vst [vmem:[#allocation2 + $0x40] sm:$0xff] %v179_v29  ;;  %v164_v32 = vadd.f32 %v261_v30, %v225_v13  ;;  %v194_v33 = vadd.f32 %v270_v31, %v225_v13 }
  0xcf   :  { %v158_v34 = vpop.f32.mrf.mxu0  ;;  %v188_v35 = vpop.f32.mrf.mxu1 }
  0xd0   :  { %202 = vst [vmem:[#allocation2 + $0x28] sm:$0xff] %v164_v32  ;;  %208 = vst [vmem:[#allocation2 + $0x58] sm:$0xff] %v194_v33  ;;  %v159_v36 = vadd.f32 %v225_v13, %v158_v34  ;;  %v189_v37 = vadd.f32 %v225_v13, %v188_v35 }
  0xd2   :  { %201 = vst [vmem:[#allocation2 + $0x20] sm:$0xff] %v159_v36  ;;  %207 = vst [vmem:[#allocation2 + $0x50] sm:$0xff] %v189_v37 }
  0xd3   :  { %287 = shalt.err (!%p284_p4)
}
  0xd4   :  { %s299_s13 = smov 128   ;;  %s300_s14 = smov 8  }
  0xd5   :  { %220 = dma.vmem_to_hbm [thread:$0]  %s215_s2, 1536, %s381_s3, [#allocation3], %s299_s13, %s299_s13, %s300_s14  }
  0xd6   :  { %296 = dma.done.wait [#allocation3], 1536  }
  0xd7   :  { %297 = vsyncadd [#allocation3], 4294965760 }
  0xd8   :  { %224 = vsyncpa [#allocation3], 1 }

</bundles_post_ra>
